<compile_context>
chip_gen: v7x
topology: tpu7x:2x2x1
jax: 0.10.0
libtpu: 0.0.40
codegen_flags: <defaults>
</compile_context>

<pallas_src>
import functools

import jax
import jax.numpy as jnp
from jax import lax
from jax.experimental import pallas as pl
from jax.experimental.pallas import tpu as pltpu

LN_EPS = 1e-5
LANE = 128


def _round_up(x, m):
    return (x + m - 1) // m * m


# ----------------------------- fused Pallas kernel -------------------------- #

def _build_down1d_kernel(*, K, stride, L_out, pad, cin_p, cout_p, c_real,
                         front, s_rows, mxu_dtype, activ=None):
    """Kernel for one batch element:
         y0  = LN(conv_s(x)) [+ activ]     (down, stride = `stride`)
         y1  = LN(conv_1(y0))              (layers[0])
         out = y1 + LN(conv_1(y1))         (layers[1], residual)
       Intermediates never leave VMEM."""
    inv_c = 1.0 / c_real
    Q = (K - 1) // 2
    tail = s_rows - front - L_out            # == pad

    def layer_norm(y, gamma, beta):
        # One-pass mean/variance over the `c_real` live channels.  Padded lanes are
        # exactly zero (zero-padded weights/bias/gamma/beta), so full-lane sums
        # equal sums over the real channels.
        s1 = jnp.sum(y, axis=-1, keepdims=True)
        s2 = jnp.sum(y * y, axis=-1, keepdims=True)
        mean = s1 * inv_c
        var = jnp.maximum(s2 * inv_c - mean * mean, 0.0)
        return (y - mean) * lax.rsqrt(var + LN_EPS) * gamma + beta

    def stash(dst_ref, y):
        # Write only the constant-size halo + the interior each step (no full-slab
        # zero sweep).  Front halo: `front` aligned rows.  Tail halo: `tail` zero
        # rows appended to `y` so the store starts at the 16-aligned `front` row
        # and runs to the end of the ref (safe for bf16 sublane packing).
        dst_ref[0:front, :] = jnp.zeros((front, cout_p), dst_ref.dtype)
        if tail > 0:
            y = jnp.concatenate([y, jnp.zeros((tail, cout_p), y.dtype)], axis=0)
        dst_ref[front:s_rows, :] = y.astype(dst_ref.dtype)

    def conv1_ln(src_ref, w_ref, bias, gamma, beta):
        # stride-1 conv over the front-aligned, zero-haloed scratch (mxu_dtype).
        acc = jnp.dot(src_ref[front - pad:front - pad + L_out, :], w_ref[0],
                      preferred_element_type=jnp.float32)
        for k in range(1, K):                                  # K is tiny: unrolled
            start = front - pad + k
            acc = acc + jnp.dot(src_ref[start:start + L_out, :], w_ref[k],
                                preferred_element_type=jnp.float32)
        return layer_norm(acc + bias, gamma, beta)

    def tail_layers(w0_ref, w1_ref, p_ref, o_ref, s0_ref, s1_ref, y0):
        stash(s0_ref, y0)
        # layers[0]: stride-1 conv + LN, input stays in VMEM
        y1 = conv1_ln(s0_ref, w0_ref, p_ref[3:4, :], p_ref[4:5, :], p_ref[5:6, :])
        stash(s1_ref, y1)
        # layers[1]: stride-1 conv + LN + residual (residual from the f32 local y1)
        y2 = conv1_ln(s1_ref, w1_ref, p_ref[6:7, :], p_ref[7:8, :], p_ref[8:9, :])
        o_ref[0] = (y1 + y2).astype(o_ref.dtype)

    if stride == 2:
        def kernel(xr_ref, wdp_ref, wdl_ref, w0_ref, w1_ref, p_ref, o_ref,
                   s0_ref, s1_ref):
            # down: merged phase-pair taps (contraction 2*cin_p, fills 256-deep MXU
            # on v6e/v7x) + the lone last tap at half depth.
            acc = jnp.dot(xr_ref[0, 0:L_out, :], wdp_ref[0],
                          preferred_element_type=jnp.float32)
            for q in range(1, Q):
                acc = acc + jnp.dot(xr_ref[0, q:q + L_out, :], wdp_ref[q],
                                    preferred_element_type=jnp.float32)
            acc = acc + jnp.dot(xr_ref[0, Q:Q + L_out, 0:cin_p], wdl_ref[...],
                                preferred_element_type=jnp.float32)
            y0 = layer_norm(acc + p_ref[0:1, :], p_ref[1:2, :], p_ref[2:3, :])
            if activ is not None:
                y0 = activ(y0)
            tail_layers(w0_ref, w1_ref, p_ref, o_ref, s0_ref, s1_ref, y0)
    else:
        def kernel(xr_ref, wd_ref, w0_ref, w1_ref, p_ref, o_ref, s0_ref, s1_ref):
            acc = jnp.dot(xr_ref[0, 0:L_out, :], wd_ref[0],
                          preferred_element_type=jnp.float32)
            for k in range(1, K):
                acc = acc + jnp.dot(xr_ref[0, k:k + L_out, :], wd_ref[k],
                                    preferred_element_type=jnp.float32)
            y0 = layer_norm(acc + p_ref[0:1, :], p_ref[1:2, :], p_ref[2:3, :])
            if activ is not None:
                y0 = activ(y0)
            tail_layers(w0_ref, w1_ref, p_ref, o_ref, s0_ref, s1_ref, y0)

    return kernel


# --------------------------------- JAX glue --------------------------------- #

def _prep_conv_weights(w, cin_p, cout_p, mxu_dtype):
    """PyTorch Conv1d weight (Cout, Cin, K) -> per-tap (K, cin_p, cout_p), zero-padded."""
    Cout, Cin, K = w.shape
    wt = jnp.transpose(w, (2, 1, 0))                              # (K, Cin, Cout)
    wt = jnp.pad(wt, ((0, 0), (0, cin_p - Cin), (0, cout_p - Cout)))
    return wt.astype(mxu_dtype)


def _prep_affine(blocks, cout_p):
    """Stack (bias, gamma, beta) of all layers into a single (3*len, cout_p) f32 array.
    Zero padding of gamma/beta/bias is what keeps padded lanes exactly zero."""
    rows = []
    for (_, b, g, bt) in blocks:
        for v in (b, g, bt):
            rows.append(jnp.pad(v, (0, cout_p - v.shape[0])))
    return jnp.stack(rows).astype(jnp.float32)


def down1d_forward(x, params, *, kernel_size=3, stride=2, activ=None,
                   mxu_dtype=jnp.bfloat16, trim_output=True):
    """Down1D.forward (num_layers=3, dropout=0).  x: (B, L, Cin) -> (B, L_out, Cout)."""
    wd = params["down"][0]
    w0 = params["layer0"][0]
    w1 = params["layer1"][0]
    B, L, Cin = x.shape
    Cout = wd.shape[0]
    K = kernel_size
    pad = (K - 1) // 2
    assert K % 2 == 1 and stride in (1, 2)
    assert stride == 1 or K >= 3
    assert wd.shape == (Cout, Cin, K) and w0.shape == (Cout, Cout, K) == w1.shape

    L_out = (L + 2 * pad - K) // stride + 1
    cin_p = _round_up(Cin, LANE)
    cout_p = _round_up(Cout, LANE)
    Q = (K - 1) // 2
    front = _round_up(max(pad, 1), 16)       # 16-row aligned store offset (bf16 packing)
    s_rows = front + L_out + pad

    # Activations: fused cast-to-mxu_dtype + channel pad to a full 128-lane tile.
    # For stride=2, fold the stride onto the lane axis (even/odd phases) so every
    # in-kernel tap slice is a contiguous, lane-aligned block (no im2col).
    xm = x.astype(mxu_dtype)
    if stride == 2:
        l_half = L_out + Q
        rows = 2 * l_half
        x_pad = jnp.pad(xm, ((0, 0), (pad, rows - pad - L), (0, cin_p - Cin)))
        xr = x_pad.reshape(B, l_half, 2 * cin_p)      # free: row-major re-view
    else:
        rows = L_out + 2 * pad
        xr = jnp.pad(xm, ((0, 0), (pad, rows - pad - L), (0, cin_p - Cin)))
    x_rows, x_lanes = xr.shape[1], xr.shape[2]

    wd_taps = _prep_conv_weights(wd, cin_p, cout_p, mxu_dtype)    # (K, cin_p, cout_p)
    w0_p = _prep_conv_weights(w0, cout_p, cout_p, mxu_dtype)
    w1_p = _prep_conv_weights(w1, cout_p, cout_p, mxu_dtype)
    p9 = _prep_affine([params["down"], params["layer0"], params["layer1"]], cout_p)

    kernel = _build_down1d_kernel(K=K, stride=stride, L_out=L_out, pad=pad,
                                  cin_p=cin_p, cout_p=cout_p, c_real=Cout,
                                  front=front, s_rows=s_rows,
                                  mxu_dtype=mxu_dtype, activ=activ)

    if stride == 2:
        # Phase-paired taps (k=2q, k=2q+1) stacked along the contraction axis,
        # plus the final lone tap k=K-1 kept at half depth (no wasted zeros).
        wd_pairs = wd_taps[:2 * Q].reshape(Q, 2 * cin_p, cout_p)
        wd_last = wd_taps[2 * Q]
        w_ops = (wd_pairs, wd_last, w0_p, w1_p, p9)
        w_specs = [pl.BlockSpec((Q, 2 * cin_p, cout_p), lambda b: (0, 0, 0)),
                   pl.BlockSpec((cin_p, cout_p), lambda b: (0, 0)),
                   pl.BlockSpec((K, cout_p, cout_p), lambda b: (0, 0, 0)),
                   pl.BlockSpec((K, cout_p, cout_p), lambda b: (0, 0, 0)),
                   pl.BlockSpec((9, cout_p), lambda b: (0, 0))]
    else:
        w_ops = (wd_taps, w0_p, w1_p, p9)
        w_specs = [pl.BlockSpec((K, cin_p, cout_p), lambda b: (0, 0, 0)),
                   pl.BlockSpec((K, cout_p, cout_p), lambda b: (0, 0, 0)),
                   pl.BlockSpec((K, cout_p, cout_p), lambda b: (0, 0, 0)),
                   pl.BlockSpec((9, cout_p), lambda b: (0, 0))]

    itm = jnp.dtype(mxu_dtype).itemsize
    out_itm = jnp.dtype(x.dtype).itemsize
    w_bytes = sum(int(w.size) for w in w_ops[:-1]) * itm + int(p9.size) * 4
    flops = int(2 * B * L_out * K * (cin_p * cout_p + 2 * cout_p * cout_p))
    transc = int(3 * B * L_out)                                   # rsqrt per row per layer
    bytes_accessed = int(xr.size) * itm + w_bytes + B * L_out * cout_p * out_itm

    # Per-step VMEM working set: double-buffered input/output blocks, the constant
    # weight blocks, and the two scratch slabs.  Derive the limit instead of
    # hard-coding it so longer sequences don't silently overflow the default.
    per_step = (2 * x_rows * x_lanes * itm
                + 2 * w_bytes
                + 2 * L_out * cout_p * out_itm
                + 2 * s_rows * cout_p * itm)
    vmem_limit = int(min(100 * 1024 * 1024, max(32 * 1024 * 1024, 2 * per_step)))

    out_padded = pl.pallas_call(
        kernel,
        out_shape=jax.ShapeDtypeStruct((B, L_out, cout_p), x.dtype),
        grid=(B,),
        in_specs=[pl.BlockSpec((1, x_rows, x_lanes), lambda b: (b, 0, 0))] + w_specs,
        out_specs=pl.BlockSpec((1, L_out, cout_p), lambda b: (b, 0, 0)),
        scratch_shapes=[
            pltpu.VMEM((s_rows, cout_p), mxu_dtype),   # y0 (zero halo, mxu_dtype)
            pltpu.VMEM((s_rows, cout_p), mxu_dtype),   # y1 (zero halo, mxu_dtype)
        ],
        compiler_params=pltpu.CompilerParams(
            dimension_semantics=("parallel",),          # megacore / 2 TCs on v7x
            vmem_limit_bytes=vmem_limit,
        ),
        cost_estimate=pl.CostEstimate(flops=flops, transcendentals=transc,
                                      bytes_accessed=bytes_accessed),
    )(xr, *w_ops)

    # Chained Down1D blocks should pass trim_output=False to stay in padded layout.
    return out_padded[..., :Cout] if trim_output else out_padded


# ----------------------------- pure-JAX reference ---------------------------- #

def _conv_norm_ref(x_nlc, params, stride, padding, activ=None, operand_dtype=None):
    w, b, gamma, beta = params
    x_ncl = jnp.transpose(x_nlc, (0, 2, 1))
    if operand_dtype is not None:
        x_ncl = x_ncl.astype(operand_dtype)
        w = w.astype(operand_dtype)
    y = lax.conv_general_dilated(x_ncl, w, window_strides=(stride,),
                                 padding=[(padding, padding)],
                                 dimension_numbers=("NCH", "OIH", "NCH"),
                                 preferred_element_type=jnp.float32)
    y = y + b[None, :, None]
    y = jnp.transpose(y, (0, 2, 1))
    mean = y.mean(-1, keepdims=True)
    var = ((y - mean) ** 2).mean(-1, keepdims=True)
    y = (y - mean) / jnp.sqrt(var + LN_EPS) * gamma + beta
    return activ(y) if activ is not None else y


def _down1d_ref(x_nlc, params, kernel_size=3, stride=2, activ=None, operand_dtype=None):
    pad = (kernel_size - 1) // 2
    y = _conv_norm_ref(x_nlc, params["down"], stride, pad, activ, operand_dtype)
    y = _conv_norm_ref(y, params["layer0"], 1, pad, None, operand_dtype)
    y = y + _conv_norm_ref(y, params["layer1"], 1, pad, None, operand_dtype)
    return y


# ------------------------------------ main ----------------------------------- #

def _init_block(key, cin, cout, k):
    kw, kb = jax.random.split(key)
    w = jax.random.normal(kw, (cout, cin, k), jnp.float32) * 0.1
    b = jax.random.normal(kb, (cout,), jnp.float32) * 0.1
    gamma = jnp.ones((cout,), jnp.float32)
    beta = jnp.zeros((cout,), jnp.float32)
    return (w, b, gamma, beta)


if __name__ == "__main__":
    B, L, C_IN, C_OUT, K = 2, 16, 4, 8, 3

    root = jax.random.PRNGKey(0)
    kx, k0, k1, k2 = jax.random.split(root, 4)
    x = jax.random.normal(kx, (B, L, C_IN), jnp.float32)          # (B, L, C_in)

    params = {
        "down":   _init_block(k0, C_IN, C_OUT, K),
        "layer0": _init_block(k1, C_OUT, C_OUT, K),
        "layer1": _init_block(k2, C_OUT, C_OUT, K),
    }
    L_OUT = (L + 2 * ((K - 1) // 2) - K) // 2 + 1

    # Fast path: bf16 MXU operands + bf16 scratch, f32 accumulation + f32 LayerNorm.
    fwd_bf16 = jax.jit(functools.partial(down1d_forward, kernel_size=K, stride=2,
                                         mxu_dtype=jnp.bfloat16))
    out_bf16 = fwd_bf16(x, params)
    jax.block_until_ready(out_bf16)
    assert out_bf16.shape == (B, L_OUT, C_OUT)
    ref_bf16 = _down1d_ref(x, params, kernel_size=K, stride=2,
                           operand_dtype=jnp.bfloat16)
    assert jnp.allclose(out_bf16, ref_bf16, atol=2e-2, rtol=2e-2), \
        "bf16-operand path mismatch vs bf16-operand JAX reference"

    # Exact-semantics path: f32 MXU operands + f32 scratch, tight check vs reference.
    fwd_f32 = jax.jit(functools.partial(down1d_forward, kernel_size=K, stride=2,
                                        mxu_dtype=jnp.float32))
    out_f32 = fwd_f32(x, params)
    jax.block_until_ready(out_f32)
    ref_f32 = _down1d_ref(x, params, kernel_size=K, stride=2)
    assert out_f32.shape == (B, L_OUT, C_OUT)
    assert jnp.allclose(out_f32, ref_f32, atol=1e-4, rtol=1e-4), \
        "f32 path mismatch vs JAX reference"

    print("KERNEL_OK")
</pallas_src>

<mosaic_0001>
module attributes {stable_mosaic.version = 11 : i64} {
  func.func @kernel(%arg0: i32, %arg1: memref<1x9x256xbf16, #tpu.memory_space<vmem>>, %arg2: memref<1x256x128xbf16, #tpu.memory_space<vmem>>, %arg3: memref<128x128xbf16, #tpu.memory_space<vmem>>, %arg4: memref<3x128x128xbf16, #tpu.memory_space<vmem>>, %arg5: memref<3x128x128xbf16, #tpu.memory_space<vmem>>, %arg6: memref<9x128xf32, #tpu.memory_space<vmem>>, %arg7: memref<1x8x128xf32, #tpu.memory_space<vmem>>, %arg8: memref<25x128xbf16, #tpu.memory_space<vmem>>, %arg9: memref<25x128xbf16, #tpu.memory_space<vmem>>) attributes {dimension_semantics = [#tpu.dimension_semantics<parallel>], iteration_bounds = array<i64: 2>, scalar_prefetch = 0 : i64, scratch_operands = 2 : i64, tpu.core_type = #tpu.core_type<tc>, window_params = [{transform_indices = @transform_0, window_bounds = array<i64: 1, 9, 256>}, {pipeline_mode = #tpu.pipeline_mode<synchronous>, transform_indices = @transform_1, window_bounds = array<i64: 1, 256, 128>}, {pipeline_mode = #tpu.pipeline_mode<synchronous>, transform_indices = @transform_2, window_bounds = array<i64: 128, 128>}, {pipeline_mode = #tpu.pipeline_mode<synchronous>, transform_indices = @transform_3, window_bounds = array<i64: 3, 128, 128>}, {pipeline_mode = #tpu.pipeline_mode<synchronous>, transform_indices = @transform_4, window_bounds = array<i64: 3, 128, 128>}, {pipeline_mode = #tpu.pipeline_mode<synchronous>, transform_indices = @transform_5, window_bounds = array<i64: 9, 128>}, {transform_indices = @transform_6, window_bounds = array<i64: 1, 8, 128>}]} {
    %c0 = arith.constant 0 : index
    %c0_0 = arith.constant 0 : index
    %c0_1 = arith.constant 0 : index
    %0 = vector.load %arg1[%c0, %c0_0, %c0_1] : memref<1x9x256xbf16, #tpu.memory_space<vmem>>, vector<1x8x256xbf16>
    %1 = vector.shape_cast %0 : vector<1x8x256xbf16> to vector<8x256xbf16>
    %c0_2 = arith.constant 0 : index
    %c0_3 = arith.constant 0 : index
    %c0_4 = arith.constant 0 : index
    %2 = vector.load %arg2[%c0_2, %c0_3, %c0_4] : memref<1x256x128xbf16, #tpu.memory_space<vmem>>, vector<1x256x128xbf16>
    %3 = vector.shape_cast %2 : vector<1x256x128xbf16> to vector<256x128xbf16>
    %cst = arith.constant dense<0.000000e+00> : vector<8x128xf32>
    %4 = tpu.matmul %1, %3, %cst {dimension_numbers = #tpu.dot_dimension_numbers<[1], [0], [0], [1], [0, 0, 1, 1], [], []>} : vector<8x256xbf16>, vector<256x128xbf16>, vector<8x128xf32> -> vector<8x128xf32>
    %c0_5 = arith.constant 0 : index
    %c1 = arith.constant 1 : index
    %c0_6 = arith.constant 0 : index
    %5 = vector.load %arg1[%c0_5, %c1, %c0_6] : memref<1x9x256xbf16, #tpu.memory_space<vmem>>, vector<1x8x128xbf16>
    %6 = vector.shape_cast %5 : vector<1x8x128xbf16> to vector<8x128xbf16>
    %c0_7 = arith.constant 0 : index
    %c0_8 = arith.constant 0 : index
    %7 = vector.load %arg3[%c0_7, %c0_8] : memref<128x128xbf16, #tpu.memory_space<vmem>>, vector<128x128xbf16>
    %cst_9 = arith.constant dense<0.000000e+00> : vector<8x128xf32>
    %8 = tpu.matmul %6, %7, %cst_9 {dimension_numbers = #tpu.dot_dimension_numbers<[1], [0], [0], [1], [0, 0, 1, 1], [], []>} : vector<8x128xbf16>, vector<128x128xbf16>, vector<8x128xf32> -> vector<8x128xf32>
    %9 = arith.addf %4, %8 : vector<8x128xf32>
    %c0_10 = arith.constant 0 : index
    %c0_11 = arith.constant 0 : index
    %10 = vector.load %arg6[%c0_10, %c0_11] : memref<9x128xf32, #tpu.memory_space<vmem>>, vector<1x128xf32>
    %11 = vector.broadcast %10 : vector<1x128xf32> to vector<8x128xf32>
    %12 = arith.addf %9, %11 : vector<8x128xf32>
    %c1_12 = arith.constant 1 : index
    %c0_13 = arith.constant 0 : index
    %13 = vector.load %arg6[%c1_12, %c0_13] : memref<9x128xf32, #tpu.memory_space<vmem>>, vector<1x128xf32>
    %c2 = arith.constant 2 : index
    %c0_14 = arith.constant 0 : index
    %14 = vector.load %arg6[%c2, %c0_14] : memref<9x128xf32, #tpu.memory_space<vmem>>, vector<1x128xf32>
    %cst_15 = arith.constant dense<0.000000e+00> : vector<8xf32>
    %15 = vector.multi_reduction <add>, %12, %cst_15 [1] : vector<8x128xf32> to vector<8xf32>
    %16 = vector.shape_cast %15 : vector<8xf32> to vector<8x1xf32>
    %17 = arith.mulf %12, %12 : vector<8x128xf32>
    %cst_16 = arith.constant dense<0.000000e+00> : vector<8xf32>
    %18 = vector.multi_reduction <add>, %17, %cst_16 [1] : vector<8x128xf32> to vector<8xf32>
    %19 = vector.shape_cast %18 : vector<8xf32> to vector<8x1xf32>
    %cst_17 = arith.constant 1.250000e-01 : f32
    %20 = vector.broadcast %cst_17 : f32 to vector<8x1xf32>
    %21 = arith.mulf %16, %20 : vector<8x1xf32>
    %cst_18 = arith.constant 1.250000e-01 : f32
    %22 = vector.broadcast %cst_18 : f32 to vector<8x1xf32>
    %23 = arith.mulf %19, %22 : vector<8x1xf32>
    %24 = arith.mulf %21, %21 : vector<8x1xf32>
    %25 = arith.subf %23, %24 : vector<8x1xf32>
    %cst_19 = arith.constant 0.000000e+00 : f32
    %26 = vector.broadcast %cst_19 : f32 to vector<8x1xf32>
    %27 = arith.maximumf %25, %26 : vector<8x1xf32>
    %28 = vector.broadcast %21 : vector<8x1xf32> to vector<8x128xf32>
    %29 = arith.subf %12, %28 : vector<8x128xf32>
    %cst_20 = arith.constant 9.99999974E-6 : f32
    %30 = vector.broadcast %cst_20 : f32 to vector<8x1xf32>
    %31 = arith.addf %27, %30 : vector<8x1xf32>
    %32 = math.rsqrt %31 : vector<8x1xf32>
    %33 = vector.broadcast %32 : vector<8x1xf32> to vector<8x128xf32>
    %34 = arith.mulf %29, %33 : vector<8x128xf32>
    %35 = vector.broadcast %13 : vector<1x128xf32> to vector<8x128xf32>
    %36 = arith.mulf %34, %35 : vector<8x128xf32>
    %37 = vector.broadcast %14 : vector<1x128xf32> to vector<8x128xf32>
    %38 = arith.addf %36, %37 : vector<8x128xf32>
    %cst_21 = arith.constant 0.000000e+00 : bf16
    %39 = vector.broadcast %cst_21 : bf16 to vector<16x128xbf16>
    %c0_22 = arith.constant 0 : index
    %c0_23 = arith.constant 0 : index
    %40 = vector.load %arg8[%c0_22, %c0_23] : memref<25x128xbf16, #tpu.memory_space<vmem>>, vector<16x128xbf16>
    tpu.vector_store %arg8[%c0_22, %c0_23], %39 {strides = array<i32>} : memref<25x128xbf16, #tpu.memory_space<vmem>>, vector<16x128xbf16>,
    %cst_24 = arith.constant 0.000000e+00 : f32
    %41 = vector.broadcast %cst_24 : f32 to vector<1x128xf32>
    %42 = tpu.concatenate %38, %41 in 0 : vector<8x128xf32>, vector<1x128xf32> -> vector<9x128xf32>
    %43 = arith.truncf %42 : vector<9x128xf32> to vector<9x128xbf16>
    %c16 = arith.constant 16 : index
    %c0_25 = arith.constant 0 : index
    %44 = vector.load %arg8[%c16, %c0_25] : memref<25x128xbf16, #tpu.memory_space<vmem>>, vector<9x128xbf16>
    tpu.vector_store %arg8[%c16, %c0_25], %43 {strides = array<i32>} : memref<25x128xbf16, #tpu.memory_space<vmem>>, vector<9x128xbf16>,
    %c3 = arith.constant 3 : index
    %c0_26 = arith.constant 0 : index
    %45 = vector.load %arg6[%c3, %c0_26] : memref<9x128xf32, #tpu.memory_space<vmem>>, vector<1x128xf32>
    %c4 = arith.constant 4 : index
    %c0_27 = arith.constant 0 : index
    %46 = vector.load %arg6[%c4, %c0_27] : memref<9x128xf32, #tpu.memory_space<vmem>>, vector<1x128xf32>
    %c5 = arith.constant 5 : index
    %c0_28 = arith.constant 0 : index
    %47 = vector.load %arg6[%c5, %c0_28] : memref<9x128xf32, #tpu.memory_space<vmem>>, vector<1x128xf32>
    %c15 = arith.constant 15 : index
    %c0_29 = arith.constant 0 : index
    %48 = vector.load %arg8[%c15, %c0_29] : memref<25x128xbf16, #tpu.memory_space<vmem>>, vector<8x128xbf16>
    %c0_30 = arith.constant 0 : index
    %c0_31 = arith.constant 0 : index
    %c0_32 = arith.constant 0 : index
    %49 = vector.load %arg4[%c0_30, %c0_31, %c0_32] : memref<3x128x128xbf16, #tpu.memory_space<vmem>>, vector<1x128x128xbf16>
    %50 = vector.shape_cast %49 : vector<1x128x128xbf16> to vector<128x128xbf16>
    %cst_33 = arith.constant dense<0.000000e+00> : vector<8x128xf32>
    %51 = tpu.matmul %48, %50, %cst_33 {dimension_numbers = #tpu.dot_dimension_numbers<[1], [0], [0], [1], [0, 0, 1, 1], [], []>} : vector<8x128xbf16>, vector<128x128xbf16>, vector<8x128xf32> -> vector<8x128xf32>
    %c16_34 = arith.constant 16 : index
    %c0_35 = arith.constant 0 : index
    %52 = vector.load %arg8[%c16_34, %c0_35] : memref<25x128xbf16, #tpu.memory_space<vmem>>, vector<8x128xbf16>
    %c1_36 = arith.constant 1 : index
    %c0_37 = arith.constant 0 : index
    %c0_38 = arith.constant 0 : index
    %53 = vector.load %arg4[%c1_36, %c0_37, %c0_38] : memref<3x128x128xbf16, #tpu.memory_space<vmem>>, vector<1x128x128xbf16>
    %54 = vector.shape_cast %53 : vector<1x128x128xbf16> to vector<128x128xbf16>
    %cst_39 = arith.constant dense<0.000000e+00> : vector<8x128xf32>
    %55 = tpu.matmul %52, %54, %cst_39 {dimension_numbers = #tpu.dot_dimension_numbers<[1], [0], [0], [1], [0, 0, 1, 1], [], []>} : vector<8x128xbf16>, vector<128x128xbf16>, vector<8x128xf32> -> vector<8x128xf32>
    %56 = arith.addf %51, %55 : vector<8x128xf32>
    %c17 = arith.constant 17 : index
    %c0_40 = arith.constant 0 : index
    %57 = vector.load %arg8[%c17, %c0_40] : memref<25x128xbf16, #tpu.memory_space<vmem>>, vector<8x128xbf16>
    %c2_41 = arith.constant 2 : index
    %c0_42 = arith.constant 0 : index
    %c0_43 = arith.constant 0 : index
    %58 = vector.load %arg4[%c2_41, %c0_42, %c0_43] : memref<3x128x128xbf16, #tpu.memory_space<vmem>>, vector<1x128x128xbf16>
    %59 = vector.shape_cast %58 : vector<1x128x128xbf16> to vector<128x128xbf16>
    %cst_44 = arith.constant dense<0.000000e+00> : vector<8x128xf32>
    %60 = tpu.matmul %57, %59, %cst_44 {dimension_numbers = #tpu.dot_dimension_numbers<[1], [0], [0], [1], [0, 0, 1, 1], [], []>} : vector<8x128xbf16>, vector<128x128xbf16>, vector<8x128xf32> -> vector<8x128xf32>
    %61 = arith.addf %56, %60 : vector<8x128xf32>
    %62 = vector.broadcast %45 : vector<1x128xf32> to vector<8x128xf32>
    %63 = arith.addf %61, %62 : vector<8x128xf32>
    %cst_45 = arith.constant dense<0.000000e+00> : vector<8xf32>
    %64 = vector.multi_reduction <add>, %63, %cst_45 [1] : vector<8x128xf32> to vector<8xf32>
    %65 = vector.shape_cast %64 : vector<8xf32> to vector<8x1xf32>
    %66 = arith.mulf %63, %63 : vector<8x128xf32>
    %cst_46 = arith.constant dense<0.000000e+00> : vector<8xf32>
    %67 = vector.multi_reduction <add>, %66, %cst_46 [1] : vector<8x128xf32> to vector<8xf32>
    %68 = vector.shape_cast %67 : vector<8xf32> to vector<8x1xf32>
    %cst_47 = arith.constant 1.250000e-01 : f32
    %69 = vector.broadcast %cst_47 : f32 to vector<8x1xf32>
    %70 = arith.mulf %65, %69 : vector<8x1xf32>
    %cst_48 = arith.constant 1.250000e-01 : f32
    %71 = vector.broadcast %cst_48 : f32 to vector<8x1xf32>
    %72 = arith.mulf %68, %71 : vector<8x1xf32>
    %73 = arith.mulf %70, %70 : vector<8x1xf32>
    %74 = arith.subf %72, %73 : vector<8x1xf32>
    %cst_49 = arith.constant 0.000000e+00 : f32
    %75 = vector.broadcast %cst_49 : f32 to vector<8x1xf32>
    %76 = arith.maximumf %74, %75 : vector<8x1xf32>
    %77 = vector.broadcast %70 : vector<8x1xf32> to vector<8x128xf32>
    %78 = arith.subf %63, %77 : vector<8x128xf32>
    %cst_50 = arith.constant 9.99999974E-6 : f32
    %79 = vector.broadcast %cst_50 : f32 to vector<8x1xf32>
    %80 = arith.addf %76, %79 : vector<8x1xf32>
    %81 = math.rsqrt %80 : vector<8x1xf32>
    %82 = vector.broadcast %81 : vector<8x1xf32> to vector<8x128xf32>
    %83 = arith.mulf %78, %82 : vector<8x128xf32>
    %84 = vector.broadcast %46 : vector<1x128xf32> to vector<8x128xf32>
    %85 = arith.mulf %83, %84 : vector<8x128xf32>
    %86 = vector.broadcast %47 : vector<1x128xf32> to vector<8x128xf32>
    %87 = arith.addf %85, %86 : vector<8x128xf32>
    %cst_51 = arith.constant 0.000000e+00 : bf16
    %88 = vector.broadcast %cst_51 : bf16 to vector<16x128xbf16>
    %c0_52 = arith.constant 0 : index
    %c0_53 = arith.constant 0 : index
    %89 = vector.load %arg9[%c0_52, %c0_53] : memref<25x128xbf16, #tpu.memory_space<vmem>>, vector<16x128xbf16>
    tpu.vector_store %arg9[%c0_52, %c0_53], %88 {strides = array<i32>} : memref<25x128xbf16, #tpu.memory_space<vmem>>, vector<16x128xbf16>,
    %cst_54 = arith.constant 0.000000e+00 : f32
    %90 = vector.broadcast %cst_54 : f32 to vector<1x128xf32>
    %91 = tpu.concatenate %87, %90 in 0 : vector<8x128xf32>, vector<1x128xf32> -> vector<9x128xf32>
    %92 = arith.truncf %91 : vector<9x128xf32> to vector<9x128xbf16>
    %c16_55 = arith.constant 16 : index
    %c0_56 = arith.constant 0 : index
    %93 = vector.load %arg9[%c16_55, %c0_56] : memref<25x128xbf16, #tpu.memory_space<vmem>>, vector<9x128xbf16>
    tpu.vector_store %arg9[%c16_55, %c0_56], %92 {strides = array<i32>} : memref<25x128xbf16, #tpu.memory_space<vmem>>, vector<9x128xbf16>,
    %c6 = arith.constant 6 : index
    %c0_57 = arith.constant 0 : index
    %94 = vector.load %arg6[%c6, %c0_57] : memref<9x128xf32, #tpu.memory_space<vmem>>, vector<1x128xf32>
    %c7 = arith.constant 7 : index
    %c0_58 = arith.constant 0 : index
    %95 = vector.load %arg6[%c7, %c0_58] : memref<9x128xf32, #tpu.memory_space<vmem>>, vector<1x128xf32>
    %c8 = arith.constant 8 : index
    %c0_59 = arith.constant 0 : index
    %96 = vector.load %arg6[%c8, %c0_59] : memref<9x128xf32, #tpu.memory_space<vmem>>, vector<1x128xf32>
    %c15_60 = arith.constant 15 : index
    %c0_61 = arith.constant 0 : index
    %97 = vector.load %arg9[%c15_60, %c0_61] : memref<25x128xbf16, #tpu.memory_space<vmem>>, vector<8x128xbf16>
    %c0_62 = arith.constant 0 : index
    %c0_63 = arith.constant 0 : index
    %c0_64 = arith.constant 0 : index
    %98 = vector.load %arg5[%c0_62, %c0_63, %c0_64] : memref<3x128x128xbf16, #tpu.memory_space<vmem>>, vector<1x128x128xbf16>
    %99 = vector.shape_cast %98 : vector<1x128x128xbf16> to vector<128x128xbf16>
    %cst_65 = arith.constant dense<0.000000e+00> : vector<8x128xf32>
    %100 = tpu.matmul %97, %99, %cst_65 {dimension_numbers = #tpu.dot_dimension_numbers<[1], [0], [0], [1], [0, 0, 1, 1], [], []>} : vector<8x128xbf16>, vector<128x128xbf16>, vector<8x128xf32> -> vector<8x128xf32>
    %c16_66 = arith.constant 16 : index
    %c0_67 = arith.constant 0 : index
    %101 = vector.load %arg9[%c16_66, %c0_67] : memref<25x128xbf16, #tpu.memory_space<vmem>>, vector<8x128xbf16>
    %c1_68 = arith.constant 1 : index
    %c0_69 = arith.constant 0 : index
    %c0_70 = arith.constant 0 : index
    %102 = vector.load %arg5[%c1_68, %c0_69, %c0_70] : memref<3x128x128xbf16, #tpu.memory_space<vmem>>, vector<1x128x128xbf16>
    %103 = vector.shape_cast %102 : vector<1x128x128xbf16> to vector<128x128xbf16>
    %cst_71 = arith.constant dense<0.000000e+00> : vector<8x128xf32>
    %104 = tpu.matmul %101, %103, %cst_71 {dimension_numbers = #tpu.dot_dimension_numbers<[1], [0], [0], [1], [0, 0, 1, 1], [], []>} : vector<8x128xbf16>, vector<128x128xbf16>, vector<8x128xf32> -> vector<8x128xf32>
    %105 = arith.addf %100, %104 : vector<8x128xf32>
    %c17_72 = arith.constant 17 : index
    %c0_73 = arith.constant 0 : index
    %106 = vector.load %arg9[%c17_72, %c0_73] : memref<25x128xbf16, #tpu.memory_space<vmem>>, vector<8x128xbf16>
    %c2_74 = arith.constant 2 : index
    %c0_75 = arith.constant 0 : index
    %c0_76 = arith.constant 0 : index
    %107 = vector.load %arg5[%c2_74, %c0_75, %c0_76] : memref<3x128x128xbf16, #tpu.memory_space<vmem>>, vector<1x128x128xbf16>
    %108 = vector.shape_cast %107 : vector<1x128x128xbf16> to vector<128x128xbf16>
    %cst_77 = arith.constant dense<0.000000e+00> : vector<8x128xf32>
    %109 = tpu.matmul %106, %108, %cst_77 {dimension_numbers = #tpu.dot_dimension_numbers<[1], [0], [0], [1], [0, 0, 1, 1], [], []>} : vector<8x128xbf16>, vector<128x128xbf16>, vector<8x128xf32> -> vector<8x128xf32>
    %110 = arith.addf %105, %109 : vector<8x128xf32>
    %111 = vector.broadcast %94 : vector<1x128xf32> to vector<8x128xf32>
    %112 = arith.addf %110, %111 : vector<8x128xf32>
    %cst_78 = arith.constant dense<0.000000e+00> : vector<8xf32>
    %113 = vector.multi_reduction <add>, %112, %cst_78 [1] : vector<8x128xf32> to vector<8xf32>
    %114 = vector.shape_cast %113 : vector<8xf32> to vector<8x1xf32>
    %115 = arith.mulf %112, %112 : vector<8x128xf32>
    %cst_79 = arith.constant dense<0.000000e+00> : vector<8xf32>
    %116 = vector.multi_reduction <add>, %115, %cst_79 [1] : vector<8x128xf32> to vector<8xf32>
    %117 = vector.shape_cast %116 : vector<8xf32> to vector<8x1xf32>
    %cst_80 = arith.constant 1.250000e-01 : f32
    %118 = vector.broadcast %cst_80 : f32 to vector<8x1xf32>
    %119 = arith.mulf %114, %118 : vector<8x1xf32>
    %cst_81 = arith.constant 1.250000e-01 : f32
    %120 = vector.broadcast %cst_81 : f32 to vector<8x1xf32>
    %121 = arith.mulf %117, %120 : vector<8x1xf32>
    %122 = arith.mulf %119, %119 : vector<8x1xf32>
    %123 = arith.subf %121, %122 : vector<8x1xf32>
    %cst_82 = arith.constant 0.000000e+00 : f32
    %124 = vector.broadcast %cst_82 : f32 to vector<8x1xf32>
    %125 = arith.maximumf %123, %124 : vector<8x1xf32>
    %126 = vector.broadcast %119 : vector<8x1xf32> to vector<8x128xf32>
    %127 = arith.subf %112, %126 : vector<8x128xf32>
    %cst_83 = arith.constant 9.99999974E-6 : f32
    %128 = vector.broadcast %cst_83 : f32 to vector<8x1xf32>
    %129 = arith.addf %125, %128 : vector<8x1xf32>
    %130 = math.rsqrt %129 : vector<8x1xf32>
    %131 = vector.broadcast %130 : vector<8x1xf32> to vector<8x128xf32>
    %132 = arith.mulf %127, %131 : vector<8x128xf32>
    %133 = vector.broadcast %95 : vector<1x128xf32> to vector<8x128xf32>
    %134 = arith.mulf %132, %133 : vector<8x128xf32>
    %135 = vector.broadcast %96 : vector<1x128xf32> to vector<8x128xf32>
    %136 = arith.addf %134, %135 : vector<8x128xf32>
    %137 = arith.addf %87, %136 : vector<8x128xf32>
    %c0_84 = arith.constant 0 : index
    %c0_85 = arith.constant 0 : index
    %c0_86 = arith.constant 0 : index
    %138 = vector.load %arg7[%c0_84, %c0_85, %c0_86] : memref<1x8x128xf32, #tpu.memory_space<vmem>>, vector<1x8x128xf32>
    %139 = vector.shape_cast %138 : vector<1x8x128xf32> to vector<8x128xf32>
    %140 = vector.shape_cast %137 : vector<8x128xf32> to vector<1x8x128xf32>
    tpu.vector_store %arg7[%c0_84, %c0_85, %c0_86], %140 {strides = array<i32>} : memref<1x8x128xf32, #tpu.memory_space<vmem>>, vector<1x8x128xf32>,
    return
  }
  func.func @transform_0(%arg0: i32) -> (i32, i32, i32) {
    %c0_i32 = arith.constant 0 : i32
    %c0_i32_0 = arith.constant 0 : i32
    %c0_i32_1 = arith.constant 0 : i32
    return %arg0, %c0_i32, %c0_i32_0 : i32, i32, i32
  }
  func.func @transform_1(%arg0: i32) -> (i32, i32, i32) {
    %c0_i32 = arith.constant 0 : i32
    %c0_i32_0 = arith.constant 0 : i32
    %c0_i32_1 = arith.constant 0 : i32
    %c0_i32_2 = arith.constant 0 : i32
    return %c0_i32, %c0_i32_0, %c0_i32_1 : i32, i32, i32
  }
  func.func @transform_2(%arg0: i32) -> (i32, i32) {
    %c0_i32 = arith.constant 0 : i32
    %c0_i32_0 = arith.constant 0 : i32
    %c0_i32_1 = arith.constant 0 : i32
    return %c0_i32, %c0_i32_0 : i32, i32
  }
  func.func @transform_3(%arg0: i32) -> (i32, i32, i32) {
    %c0_i32 = arith.constant 0 : i32
    %c0_i32_0 = arith.constant 0 : i32
    %c0_i32_1 = arith.constant 0 : i32
    %c0_i32_2 = arith.constant 0 : i32
    return %c0_i32, %c0_i32_0, %c0_i32_1 : i32, i32, i32
  }
  func.func @transform_4(%arg0: i32) -> (i32, i32, i32) {
    %c0_i32 = arith.constant 0 : i32
    %c0_i32_0 = arith.constant 0 : i32
    %c0_i32_1 = arith.constant 0 : i32
    %c0_i32_2 = arith.constant 0 : i32
    return %c0_i32, %c0_i32_0, %c0_i32_1 : i32, i32, i32
  }
  func.func @transform_5(%arg0: i32) -> (i32, i32) {
    %c0_i32 = arith.constant 0 : i32
    %c0_i32_0 = arith.constant 0 : i32
    %c0_i32_1 = arith.constant 0 : i32
    return %c0_i32, %c0_i32_0 : i32, i32
  }
  func.func @transform_6(%arg0: i32) -> (i32, i32, i32) {
    %c0_i32 = arith.constant 0 : i32
    %c0_i32_0 = arith.constant 0 : i32
    %c0_i32_1 = arith.constant 0 : i32
    return %arg0, %c0_i32, %c0_i32_0 : i32, i32, i32
  }
}

</mosaic_0001>

<bundles_post_ra>
// kernel: down1d_forward.1
= control target key start
LH: loop header
LB: loop body
LE: loop exit
PB: predicated region body
PF: predicated region fallthrough
CT: control target
= control target key end

     0   :  { %11 = vsyncpa [#allocation5], 0  ;;  %s2505_s0 = inlined_call_operand.vmem [shape: bf16[2,9,256], index: 0, kind: input, shape index: {}]   ;;  %s2506_s1 = inlined_call_operand.vmem [shape: bf16[1,256,128], index: 1, kind: input, shape index: {}]   ;;  %s2507_s2 = inlined_call_operand.vmem [shape: bf16[128,128], index: 2, kind: input, shape index: {}]   ;;  %s2508_s3 = inlined_call_operand.vmem [shape: bf16[3,128,128], index: 3, kind: input, shape index: {}]   ;;  %s2509_s4 = inlined_call_operand.vmem [shape: bf16[3,128,128], index: 4, kind: input, shape index: {}]   ;;  %s2510_s5 = inlined_call_operand.vmem [shape: f32[9,128], index: 5, kind: input, shape index: {}]   ;;  %s2511_s6 = inlined_call_operand.hbm [shape: f32[2,8,128], index: 6, kind: output, shape index: {}]  }
   0x1   :  { %13 = vsyncpa [#allocation5 + $0x1], 0  ;;  %s2067_s21 = smov 0   ;;  %s2069_s22 = smov 0  }
   0x2   :  { %s2071_s23 = smov 0   ;;  %s2073_s24 = smov 0  }
   0x3 LB: > { %s2088_s25 = sadd.s32 4294967295, %s2026_s24   ;;  %s1440_s26 = sadd.s32 4294967294, %s2026_s24   ;;  %s2026_s24 = sphi %s2073_s24, %s2519_s24   ;;  %s2022_s23 = sphi %s2071_s23, %s2518_s23   ;;  %s2018_s22 = sphi %s2069_s22, %s2517_s22   ;;  %s2014_s21 = sphi %s2067_s21, %s2516_s21  }
   0x4   : > { %s2092_s27 = sadd.s32 1, %s2026_s24   ;;  %s157_s28 = sadd.s32 1, %s2022_s23 }
   0x5   : > { %s154_s29 = ssub.s32 %s2026_s24, %s2092_s27  ;;  %p167_p0 = scmp.ne.s32.totalorder %s2022_s23, %s2018_s22 }
   0x6   : > { %p155_p1 = scmp.eq.s32.totalorder %s154_s29, 0  ;;  %p168_p2 = scmp.eq.s32.totalorder %s2088_s25, 1 }
   0x7   : > { %p173_p3 = scmp.ne.s32.totalorder %s2018_s22, %s2014_s21  ;;  %p174_p4 = scmp.eq.s32.totalorder %s1440_s26, 1 }
   0x8   : > { %s2103_s30 = scalar_select %p155_p1, %s2022_s23, %s157_s28  }
   0x9   : > { %p2105_p5 = por %p168_p2, %p167_p0  ;;  %p2109_p6 = por %p174_p4, %p173_p3 }
   0xa   : > { %p1443_p7 = scmp.ge.s32.totalorder %s2026_s24, 1  ;;  %p215_p8 = scmp.lt.s32.totalorder %s2026_s24, 3 }
   0xc   : > { %p216_p9 = pnand %p1443_p7, %p215_p8 }
   0xd   : > { %v1879_v0 = vld [vmem:[%s2506_s1 + $0x40] sm:$0xff] (!%p216_p9)   ;;  %v2028_v1 = vmov (!%p216_p9), 0.0   ;;  %vm2029_vm0 = vmmov (!%p216_p9), 0   ;;  %v1882_v4 = vld [vmem:[%s2506_s1 + $0x48] sm:$0xff] (!%p216_p9)   ;;  %v1885_v7 = vld [vmem:[%s2506_s1 + $0x50] sm:$0xff] (!%p216_p9)   ;;  %p245_p10 = scmp.lt.s32.totalorder (!%p216_p9), %s2088_s25, 1 }
   0xe   : > { %219 = sbr.rel (%p216_p9) target bundleno = 1309 (0x51d), region = 44  ;;  %1697 = vmatprep.subr.bf16.mxu0 (!%p216_p9), %v2028_v1  ;;  %v1880_v2 = vld [vmem:[%s2507_s2] sm:$0xff] (!%p216_p9)   ;;  %1621 = vmatprep.subr.bf16.mxu1 (!%p216_p9), %v1879_v0  ;;  %v1883_v5 = vld [vmem:[%s2507_s2 + $0x8] sm:$0xff] (!%p216_p9)   ;;  %v1886_v8 = vld [vmem:[%s2507_s2 + $0x10] sm:$0xff] (!%p216_p9)   ;;  %vm589_vm1 = vcmask (!%p216_p9), 1040384   ;;  %v2030_v61 = vmov (!%p216_p9), 0  }
   0xf   : > { %v1881_v3 = vld [vmem:[%s2506_s1] sm:$0xff] (!%p216_p9)   ;;  %1713 = vmatprep.mubr.msk.bf16.mxu0 (!%p216_p9), %vm2029_vm0, %v2028_v1  ;;  %1698 = vmatpush3.bf16.msra.mxu0 (!%p216_p9), %v1880_v2  ;;  %v1884_v6 = vld [vmem:[%s2506_s1 + $0x8] sm:$0xff] (!%p216_p9)   ;;  %v1887_v9 = vld [vmem:[%s2506_s1 + $0x10] sm:$0xff] (!%p216_p9)   ;;  %vm590_vm2 = vsmask.f32 (!%p216_p9), 256  ;;  %s242_s29 = sand.u32 (!%p216_p9), 1, %s2018_s22  }
  0x10   : > { %1622 = vmatpush3.bf16.msra.mxu1 (!%p216_p9), %v1881_v3  ;;  %1699 = vmatprep.subr.bf16.mxu0 (!%p216_p9), %v2028_v1  ;;  %v1888_v10 = vld [vmem:[%s2506_s1 + $0x58] sm:$0xff] (!%p216_p9)   ;;  %v1891_v13 = vld [vmem:[%s2506_s1 + $0x60] sm:$0xff] (!%p216_p9)   ;;  %v1894_v16 = vld [vmem:[%s2506_s1 + $0x68] sm:$0xff] (!%p216_p9)   ;;  %579 = vst [vmem:[#allocation2 + $0x4] sm:$0xf] (!%p216_p9), %v2030_v61  ;;  %s1444_s9 = sshll.u32 (!%p216_p9), %s242_s29, 3 }
  0x11   : > { %1623 = vmatprep.subr.bf16.mxu1 (!%p216_p9), %v1882_v4  ;;  %v1889_v11 = vld [vmem:[%s2507_s2 + $0x18] sm:$0xff] (!%p216_p9)   ;;  %v1892_v14 = vld [vmem:[%s2507_s2 + $0x20] sm:$0xff] (!%p216_p9)   ;;  %v1895_v17 = vld [vmem:[%s2507_s2 + $0x28] sm:$0xff] (!%p216_p9)   ;;  %974 = vst [vmem:[#allocation3 + $0x4] sm:$0xf] (!%p216_p9), %v2030_v61  ;;  %s1604_s13 = sshll.u32 (!%p216_p9), %s2088_s25, 7 }
  0x12   : > { %v1890_v12 = vld [vmem:[%s2506_s1 + $0x18] sm:$0xff] (!%p216_p9)   ;;  %v1893_v15 = vld [vmem:[%s2506_s1 + $0x20] sm:$0xff] (!%p216_p9)   ;;  %v1896_v18 = vld [vmem:[%s2506_s1 + $0x28] sm:$0xff] (!%p216_p9)   ;;  %s244_s14 = scalar_lea.vmem (!%p216_p9), [#allocation4], %s1444_s9  ;;  %s2463_s18 = scalar_lea.hbm (!%p216_p9), %s2511_s6, %s1604_s13 }
  0x13   : > { %1700 = vmatpush3.bf16.msra.mxu0 (!%p216_p9), %v1883_v5  ;;  %v1897_v19 = vld [vmem:[%s2506_s1 + $0x70] sm:$0xff] (!%p216_p9)   ;;  %v1900_v22 = vld [vmem:[%s2506_s1 + $0x78] sm:$0xff] (!%p216_p9)   ;;  %v1474_v42 = vld [vmem:[%s2510_s5] ss:$0 sm:$0xff] (!%p216_p9)  ;;  %s1381_s15 = sshll.u32 (!%p216_p9), %s244_s14, 4  ;;  %s1368_s19 = scalar_lea.sflag (!%p216_p9), [#allocation5], %s242_s29  ;;  %s2465_s15 = int_to_ptr.vmem [resolvable:$true] %s1381_s15 }
  0x14   : > { %1624 = vmatpush3.bf16.msra.mxu1 (!%p216_p9), %v1884_v6  ;;  %1701 = vmatprep.subr.bf16.mxu0 (!%p216_p9), %v2028_v1  ;;  %v1898_v20 = vld [vmem:[%s2507_s2 + $0x30] sm:$0xff] (!%p216_p9)   ;;  %v1901_v24 = vld [vmem:[%s2507_s2 + $0x38] sm:$0xff] (!%p216_p9)   ;;  %v1906_v46 = vld [vmem:[%s2508_s3 + $0x40] sm:$0xff] (!%p216_p9)   ;;  %s1964_s20 = scalar_lea.vmem (!%p216_p9), %s2465_s15, 128 }
  0x15   : > { %1625 = vmatprep.subr.bf16.mxu1 %v1885_v7  ;;  %s246_s28 = scalar_select %p245_p10, %s2088_s25, 1  ;;  %v1899_v21 = vld [vmem:[%s2506_s1 + $0x30] sm:$0xff]   ;;  %v1902_v27 = vld [vmem:[%s2506_s1 + $0x38] sm:$0xff]   ;;  %v1907_v47 = vld [vmem:[%s2508_s3 + $0x48] sm:$0xff]  }
  0x16   : > { %v1908_v48 = vld [vmem:[%s2508_s3 + $0x50] sm:$0xff]   ;;  %v1909_v49 = vld [vmem:[%s2508_s3] sm:$0xff]   ;;  %v1910_v50 = vld [vmem:[%s2508_s3 + $0x58] sm:$0xff]   ;;  %p1965_p11 = scmp.ne.s32.totalorder %s2465_s15, %s1964_s20  ;;  %s2031_s25 = smov [#allocation4]  }
  0x17   : > { %1702 = vmatpush3.bf16.msra.mxu0 %v1886_v8  ;;  %s1607_s16 = sshll.u32 %s246_s28, 4  ;;  %v1911_v51 = vld [vmem:[%s2508_s3 + $0x8] sm:$0xff]   ;;  %v1912_v52 = vld [vmem:[%s2508_s3 + $0x60] sm:$0xff]   ;;  %v1913_v53 = vld [vmem:[%s2508_s3 + $0x10] sm:$0xff]   ;;  %s1968_s26 = sshll.u32 %s2031_s25, 4  ;;  %s1969_s26 = int_to_ptr.vmem [resolvable:$false] %s1968_s26 }
  0x18   : > { %1626 = vmatpush3.bf16.msra.mxu1 %v1887_v9  ;;  %1703 = vmatprep.subr.bf16.mxu0 %v2028_v1  ;;  %s249_s28 = scalar_lea.vmem %s2505_s0, %s1607_s16  ;;  %v1914_v54 = vld [vmem:[%s2508_s3 + $0x68] sm:$0xff]   ;;  %v1915_v55 = vld [vmem:[%s2508_s3 + $0x18] sm:$0xff]   ;;  %v1916_v56 = vld [vmem:[%s2508_s3 + $0x70] sm:$0xff]   ;;  %p1966_p12 = pnand %p1965_p11, %p2105_p5 }
  0x19   : > { %1627 = vmatprep.subr.bf16.mxu1 %v1888_v10  ;;  %v251_v23 = vld [vmem:[%s249_s28] sm:$0xff]  ;;  %vm2262_vm3 = vmand %vm589_vm1, %vm590_vm2  ;;  %v592_v59 = vld [vmem:[#allocation2 + $0xc] sm:$0x1]  ;;  %s1970_s9 = scalar_lea.vmem %s1969_s26, 256  ;;  %p1971_p0 = scmp.lt.s32.totalorder %s2465_s15, %s1969_s26 }
  0x1a   : > { %v1903_v25 = vld [vmem:[%s249_s28] ss:$8 sps:$4 sm:$0x1f]   ;;  %v1457_v26 = vcombine.high %v251_v23, %v251_v23  ;;  %v1456_v31 = vcombine.low %v251_v23, %v251_v23  ;;  %v1918_v60 = vld [vmem:[%s2508_s3 + $0x78] sm:$0xff]   ;;  %v593_v62 = vsel %vm2262_vm3, 0.0|0.0, %v592_v59  ;;  %v1922_v0 = vld [vmem:[%s2508_s3 + $0x30] sm:$0xff]   ;;  %p1967_p13 = pneg %p1966_p12  ;;  %p1972_p1 = scmp.lt.s32.totalorder %s1970_s9, %s1964_s20 }
  0x1b   : > { %1704 = vmatpush3.bf16.msra.mxu0 %v1889_v11  ;;  %v308_v28 = vshrl.u32 %v1903_v25, 16  ;;  %v310_v29 = vshll.u32 %v1903_v25, 16  ;;  %v1917_v57 = vld [vmem:[%s2508_s3 + $0x20] sm:$0xff]   ;;  %v1919_v63 = vld [vmem:[%s2508_s3 + $0x28] sm:$0xff]   ;;  %594 = vst [vmem:[#allocation2 + $0xc] sm:$0x1] %v593_v62 }
  0x1c   : > { %1628 = vmatpush3.bf16.msra.mxu1 %v1890_v12  ;;  %1705 = vmatprep.subr.bf16.mxu0 %v2028_v1  ;;  %v1924_v2 = vld [vmem:[%s2508_s3 + $0x38] sm:$0xff]   ;;  %v1923_v23 = vld [vmem:[%s2508_s3 + $0x88] sm:$0xff]   ;;  %v1935_v61 = vld [vmem:[%s2509_s4] sm:$0xff]   ;;  %p1973_p2 = por %p1972_p1, %p1971_p0 }
  0x1d   : > { %1629 = vmatprep.subr.bf16.mxu1 %v1891_v13  ;;  %538 = vmatprep.mubr.bf16.mxu1 %v1457_v26  ;;  %v312_v30 = vrot.slane %v310_v29, 1  ;;  %v1475_v13 = vld [vmem:[%s2510_s5 + $0x1] ss:$0 sm:$0xff]  ;;  %v1933_v59 = vld [vmem:[%s2509_s4 + $0x48] sm:$0xff]   ;;  %v1936_v62 = vld [vmem:[%s2509_s4 + $0x58] sm:$0xff]  }
  0x1e   : > { %v1948_v58 = vld [vmem:[%s2509_s4 + $0x30] sm:$0xff]   ;;  %p1974_p3 = pnand %p1973_p2, %p1967_p13 }
  0x1f   : > { %1706 = vmatpush3.bf16.msra.mxu0 %v1892_v14  ;;  %v313_v32 = vor.u32 %v312_v30, %v308_v28  ;;  %v1925_v28 = vld [vmem:[%s2508_s3 + $0x90] sm:$0xff]   ;;  %v1926_v30 = vld [vmem:[%s2508_s3 + $0x98] sm:$0xff]  }
  0x20   : > { %1630 = vmatpush3.bf16.msra.mxu1 %v1893_v15  ;;  %1707 = vmatprep.subr.bf16.mxu0 %v2028_v1  ;;  %v1476_v15 = vld [vmem:[%s2510_s5 + $0x2] ss:$0 sm:$0xff] }
  0x21   : > { %1631 = vmatprep.subr.bf16.mxu1 %v1894_v16 }
  0x23   : > { %1708 = vmatpush3.bf16.msra.mxu0 %v1895_v17 }
  0x24   : > { %1632 = vmatpush3.bf16.msra.mxu1 %v1896_v18  ;;  %1709 = vmatprep.subr.bf16.mxu0 %v2028_v1 }
  0x25   : > { %1633 = vmatprep.subr.bf16.mxu1 %v1897_v19  ;;  %v598_v19 = vld [vmem:[#allocation2 + $0x4] sm:$0x8] }
  0x27   : > { %1710 = vmatpush3.bf16.msra.mxu0 %v1898_v20  ;;  %v1921_v20 = vld [vmem:[%s2508_s3 + $0x80] sm:$0xff]  }
  0x28   : > { %1634 = vmatpush3.bf16.msra.mxu1 %v1899_v21  ;;  %1711 = vmatprep.subr.bf16.mxu0 %v2028_v1 }
  0x29   : > { %1635 = vmatprep.subr.bf16.mxu1 %v1900_v22 }
  0x2b   : > { %1712 = vmatpush3.bf16.msra.mxu0 %v1901_v24 }
  0x2c   : > { %1636 = vmatpush3.bf16.msra.mxu1 %v1902_v27  ;;  %1717 = vmatprep.subr.bf16.mxu0 %v2028_v1 }
  0x2d   : > { %1737 = vmatprep.subr.bf16.mxu1 %v2028_v1 }
  0x2e   : > { %1714 = vmatmul.mubr.bf16.vlgmr.msra.gmra.mrb[0].mxu0 %v313_v32  ;;  %v1928_v32 = vld [vmem:[%s2508_s3 + $0xa8] sm:$0xff]  }
  0x2f   : > { %539 = vmatmul.mubr.bf16.vlgmr.msra.gmra.mrb[0].mxu1 %v1456_v31  ;;  %1733 = vmatprep.mubr.msk.bf16.mxu0 %vm2029_vm0, %v2028_v1  ;;  %v1927_v31 = vld [vmem:[%s2508_s3 + $0xa0] sm:$0xff]  }
  0x30   : > { %1753 = vmatprep.mubr.msk.bf16.mxu1 %vm2029_vm0, %v2028_v1  ;;  %1718 = vmatpush3.bf16.msra.mxu0 %v1906_v46 }
  0x31   : > { %1719 = vmatprep.subr.bf16.mxu0 %v2028_v1  ;;  %1738 = vmatpush3.bf16.msra.mxu1 %v1909_v49  ;;  %v1537_v49 = vld [vmem:[%s2510_s5 + $0x3] ss:$0 sm:$0xff] }
  0x32   : > { %1739 = vmatprep.subr.bf16.mxu1 %v2028_v1 }
  0x34   : > { %1720 = vmatpush3.bf16.msra.mxu0 %v1907_v47 }
  0x35   : > { %1721 = vmatprep.subr.bf16.mxu0 %v2028_v1  ;;  %1740 = vmatpush3.bf16.msra.mxu1 %v1911_v51 }
  0x36   : > { %1741 = vmatprep.subr.bf16.mxu1 %v2028_v1 }
  0x38   : > { %1722 = vmatpush3.bf16.msra.mxu0 %v1908_v48 }
  0x39   : > { %1723 = vmatprep.subr.bf16.mxu0 %v2028_v1  ;;  %1742 = vmatpush3.bf16.msra.mxu1 %v1913_v53 }
  0x3a   : > { %1743 = vmatprep.subr.bf16.mxu1 %v2028_v1 }
  0x3c   : > { %1724 = vmatpush3.bf16.msra.mxu0 %v1910_v50 }
  0x3d   : > { %1725 = vmatprep.subr.bf16.mxu0 %v2028_v1  ;;  %1744 = vmatpush3.bf16.msra.mxu1 %v1915_v55 }
  0x3e   : > { %1745 = vmatprep.subr.bf16.mxu1 %v2028_v1 }
  0x40   : > { %1726 = vmatpush3.bf16.msra.mxu0 %v1912_v52 }
  0x41   : > { %1727 = vmatprep.subr.bf16.mxu0 %v2028_v1  ;;  %1746 = vmatpush3.bf16.msra.mxu1 %v1917_v57  ;;  %v1932_v57 = vld [vmem:[%s2509_s4 + $0x40] sm:$0xff]  }
  0x42   : > { %1747 = vmatprep.subr.bf16.mxu1 %v2028_v1 }
  0x44   : > { %1728 = vmatpush3.bf16.msra.mxu0 %v1914_v54 }
  0x45   : > { %1729 = vmatprep.subr.bf16.mxu0 %v2028_v1  ;;  %1748 = vmatpush3.bf16.msra.mxu1 %v1919_v63  ;;  %v1937_v63 = vld [vmem:[%s2509_s4 + $0x8] sm:$0xff]  }
  0x46   : > { %1749 = vmatprep.subr.bf16.mxu1 %v2028_v1 }
  0x48   : > { %1730 = vmatpush3.bf16.msra.mxu0 %v1916_v56 }
  0x49   : > { %1731 = vmatprep.subr.bf16.mxu0 %v2028_v1  ;;  %1750 = vmatpush3.bf16.msra.mxu1 %v1922_v0  ;;  %v1938_v0 = vld [vmem:[%s2509_s4 + $0x60] sm:$0xff]  }
  0x4a   : > { %1751 = vmatprep.subr.bf16.mxu1 %v2028_v1 }
  0x4c   : > { %1732 = vmatpush3.bf16.msra.mxu0 %v1918_v60  ;;  %v1934_v60 = vld [vmem:[%s2509_s4 + $0x50] sm:$0xff]  }
  0x4d   : > { %1757 = vmatprep.subr.bf16.mxu0 %v2028_v1  ;;  %1752 = vmatpush3.bf16.msra.mxu1 %v1924_v2  ;;  %v1939_v2 = vld [vmem:[%s2509_s4 + $0x10] sm:$0xff]  }
  0x4e   : > { %1777 = vmatprep.subr.bf16.mxu1 %v2028_v1 }
 0x101   : > { %v397_v33 = vpop.f32.mrb[0].mxu0 }
 0x102   : > { %v1637_v34 = vpop.f32.mrb[0].mxu1  ;;  %v1715_v35 = vpop.f32.mrb[1].mxu0 }
 0x103   : > { %v1638_v36 = vpop.f32.mrb[1].mxu1  ;;  %v400_v37 = vpop.f32.mrb[2].mxu0 }
 0x104   : > { %v1639_v38 = vadd.f32 %v1638_v36, %v1637_v34  ;;  %v1640_v39 = vpop.f32.mrb[2].mxu1  ;;  %v1716_v40 = vpop.f32.mrb[3].mxu0  ;;  %v1929_v34 = vld [vmem:[%s2508_s3 + $0xb0] sm:$0xff]   ;;  %v1930_v36 = vld [vmem:[%s2508_s3 + $0xb8] sm:$0xff]  }
 0x105   : > { %v1641_v41 = vpop.f32.mrb[3].mxu1 }
 0x106   : > { %v541_v43 = vadd.f32 %v1639_v38, %v397_v33 }
 0x108   : > { %v2211_v44 = vadd.f32 %v1474_v42, %v541_v43 }
 0x10a   : > { %554 = vadd.xlane.f32.xlu0 %v2211_v44  ;;  %v556_v45 = vmul.f32 %v2211_v44, %v2211_v44 }
 0x10e   : > { %557 = vadd.xlane.f32.xlu0 %v556_v45 }
 0x197   : > { %v555_v3 = vpop.xlane.xlu0 %554 }
 0x198   : > { %v559_v4 = vmul.f32 0.125, %v555_v3  ;;  %v1940_v3 = vld [vmem:[%s2509_s4 + $0x68] sm:$0xff]  }
 0x19a   : > { %v561_v6 = vmul.f32 %v559_v4, %v559_v4  ;;  %v564_v11 = vsub.f32 %v2211_v44, %v559_v4  ;;  %v1941_v4 = vld [vmem:[%s2509_s4 + $0x18] sm:$0xff]  }
 0x19b   : > { %v558_v5 = vpop.xlane.xlu0 %557 }
 0x19c   : > { %v560_v7 = vmul.f32 0.125, %v558_v5  ;;  %v1942_v5 = vld [vmem:[%s2509_s4 + $0x70] sm:$0xff]  }
 0x19e   : > { %v562_v8 = vsub.f32 %v560_v7, %v561_v6  ;;  %v1943_v6 = vld [vmem:[%s2509_s4 + $0x20] sm:$0xff]   ;;  %v984_v7 = vld [vmem:[#allocation3 + $0xc] sm:$0x1] }
 0x1a0   : > { %v563_v9 = vmax.f32 %v562_v8, 0.0  ;;  %v1944_v8 = vld [vmem:[%s2509_s4 + $0x78] sm:$0xff]  }
 0x1a2   : > { %v565_v10 = vadd.f32 1e-05, %v563_v9  ;;  %v985_v9 = vsel %vm2262_vm3, 0.0|0.0, %v984_v7 }
 0x1a3   : > { %986 = vst [vmem:[#allocation3 + $0xc] sm:$0x1] %v985_v9 }
 0x1a4   : > { %1958 = vrsqrt.f32 %v565_v10  ;;  %v1945_v10 = vld [vmem:[%s2509_s4 + $0x28] sm:$0xff]  }
 0x1ae   : > { %v1959_v12 = vpop.eup %1958 }
 0x1af   : > { %v567_v14 = vmul.f32 %v1959_v12, %v564_v11  ;;  %v1950_v11 = vld [vmem:[%s2509_s4 + $0x38] sm:$0xff]  }
 0x1b1   : > { %v572_v16 = vmul.f32 %v1475_v13, %v567_v14 }
 0x1b3   : > { %v577_v17 = vadd.f32 %v1476_v15, %v572_v16 }
 0x1b5   : > { %v1608_v18 = vpack.c.bf16 %v577_v17, %v577_v17 }
 0x1b7   : > { %588 = vst [vmem:[#allocation2 + $0x8] sm:$0xf] %v1608_v18 }
 0x1be   : > { %v599_v21 = vld [vmem:[#allocation2 + $0x8] sm:$0xf] }
 0x1bf   : > { %1734 = vmatmul.mubr.bf16.vlgmr.msra.gmra.mrb[4].mxu0 %v599_v21  ;;  %v1503_v22 = vcombine.low %v598_v19, %v599_v21  ;;  %v1931_v33 = vld [vmem:[#allocation2 + $0x8] sm:$0x1f]  }
 0x1c0   : > { %1758 = vmatpush3.bf16.msra.mxu0 %v1921_v20  ;;  %1773 = vmatprep.mubr.msk.bf16.mxu0 %vm2029_vm0, %v2028_v1  ;;  %v850_v35 = vshll.u32 %v1931_v33, 16  ;;  %v848_v38 = vshrl.u32 %v1931_v33, 16 }
 0x1c1   : > { %v727_v24 = vshrl.u32 %v1503_v22, 16  ;;  %v730_v25 = vshll.u32 %v1503_v22, 16  ;;  %1759 = vmatprep.subr.bf16.mxu0 %v2028_v1  ;;  %v1538_v22 = vld [vmem:[%s2510_s5 + $0x4] ss:$0 sm:$0xff] }
 0x1c2   : > { %v852_v37 = vrot.slane %v850_v35, 1 }
 0x1c3   : > { %v729_v26 = vrot.slane %v727_v24, 3  ;;  %v732_v27 = vrot.slane %v730_v25, 4  ;;  %v1539_v24 = vld [vmem:[%s2510_s5 + $0x5] ss:$0 sm:$0xff] }
 0x1c4   : > { %1760 = vmatpush3.bf16.msra.mxu0 %v1923_v23  ;;  %v853_v39 = vor.u32 %v852_v37, %v848_v38  ;;  %v1951_v37 = vld [vmem:[%s2509_s4 + $0x90] sm:$0xff]  }
 0x1c5   : > { %1761 = vmatprep.subr.bf16.mxu0 %v2028_v1  ;;  %v733_v29 = vor.u32 %v732_v27, %v729_v26 }
 0x1c7   : > { %1754 = vmatmul.mubr.bf16.vlgmr.msra.gmra.mrb[4].mxu1 %v733_v29  ;;  %v1947_v29 = vld [vmem:[%s2509_s4 + $0x80] sm:$0xff]  }
 0x1c8   : > { %1762 = vmatpush3.bf16.msra.mxu0 %v1925_v28  ;;  %1793 = vmatprep.mubr.msk.bf16.mxu1 %vm2029_vm0, %v2028_v1  ;;  %v990_v28 = vld [vmem:[#allocation3 + $0x4] sm:$0x8] }
 0x1c9   : > { %1763 = vmatprep.subr.bf16.mxu0 %v2028_v1  ;;  %1778 = vmatpush3.bf16.msra.mxu1 %v1932_v57 }
 0x1ca   : > { %1779 = vmatprep.subr.bf16.mxu1 %v2028_v1 }
 0x1cc   : > { %1764 = vmatpush3.bf16.msra.mxu0 %v1926_v30 }
 0x1cd   : > { %1765 = vmatprep.subr.bf16.mxu0 %v2028_v1  ;;  %1780 = vmatpush3.bf16.msra.mxu1 %v1933_v59  ;;  %v1600_v59 = vld [vmem:[%s2510_s5 + $0x6] ss:$0 sm:$0xff] }
 0x1ce   : > { %1781 = vmatprep.subr.bf16.mxu1 %v2028_v1 }
 0x1d0   : > { %1766 = vmatpush3.bf16.msra.mxu0 %v1927_v31 }
 0x1d1   : > { %1767 = vmatprep.subr.bf16.mxu0 %v2028_v1  ;;  %1782 = vmatpush3.bf16.msra.mxu1 %v1934_v60 }
 0x1d2   : > { %1783 = vmatprep.subr.bf16.mxu1 %v2028_v1 }
 0x1d4   : > { %1768 = vmatpush3.bf16.msra.mxu0 %v1928_v32  ;;  %v1949_v32 = vld [vmem:[%s2509_s4 + $0x88] sm:$0xff]  }
 0x1d5   : > { %1769 = vmatprep.subr.bf16.mxu0 %v2028_v1  ;;  %1784 = vmatpush3.bf16.msra.mxu1 %v1936_v62 }
 0x1d6   : > { %1785 = vmatprep.subr.bf16.mxu1 %v2028_v1 }
 0x1d8   : > { %1770 = vmatpush3.bf16.msra.mxu0 %v1929_v34 }
 0x1d9   : > { %1771 = vmatprep.subr.bf16.mxu0 %v2028_v1  ;;  %1786 = vmatpush3.bf16.msra.mxu1 %v1938_v0 }
 0x1da   : > { %1787 = vmatprep.subr.bf16.mxu1 %v2028_v1 }
 0x1dc   : > { %1772 = vmatpush3.bf16.msra.mxu0 %v1930_v36 }
 0x1dd   : > { %1797 = vmatprep.subr.bf16.mxu0 %v2028_v1  ;;  %1788 = vmatpush3.bf16.msra.mxu1 %v1940_v3 }
 0x1de   : > { %1789 = vmatprep.subr.bf16.mxu1 %v2028_v1 }
 0x1df   : > { %1774 = vmatmul.mubr.bf16.vlgmr.msra.gmra.mrb[8].mxu0 %v853_v39  ;;  %v1952_v39 = vld [vmem:[%s2509_s4 + $0x98] sm:$0xff]  }
 0x1e0   : > { %1813 = vmatprep.mubr.msk.bf16.mxu0 %vm2029_vm0, %v2028_v1  ;;  %1798 = vmatpush3.bf16.msra.mxu0 %v1935_v61 }
 0x1e1   : > { %1799 = vmatprep.subr.bf16.mxu0 %v2028_v1  ;;  %1790 = vmatpush3.bf16.msra.mxu1 %v1942_v5 }
 0x1e2   : > { %1791 = vmatprep.subr.bf16.mxu1 %v2028_v1 }
 0x1e4   : > { %1800 = vmatpush3.bf16.msra.mxu0 %v1937_v63 }
 0x1e5   : > { %1801 = vmatprep.subr.bf16.mxu0 %v2028_v1  ;;  %1792 = vmatpush3.bf16.msra.mxu1 %v1944_v8 }
 0x1e6   : > { %1817 = vmatprep.subr.bf16.mxu1 %v2028_v1 }
 0x1e8   : > { %1802 = vmatpush3.bf16.msra.mxu0 %v1939_v2 }
 0x1e9   : > { %1803 = vmatprep.subr.bf16.mxu0 %v2028_v1 }
 0x1ec   : > { %1804 = vmatpush3.bf16.msra.mxu0 %v1941_v4 }
 0x1ed   : > { %1805 = vmatprep.subr.bf16.mxu0 %v2028_v1 }
 0x1f0   : > { %1806 = vmatpush3.bf16.msra.mxu0 %v1943_v6 }
 0x1f1   : > { %1807 = vmatprep.subr.bf16.mxu0 %v2028_v1 }
 0x1f4   : > { %1808 = vmatpush3.bf16.msra.mxu0 %v1945_v10 }
 0x1f5   : > { %1809 = vmatprep.subr.bf16.mxu0 %v2028_v1 }
 0x1f8   : > { %1810 = vmatpush3.bf16.msra.mxu0 %v1948_v58 }
 0x1f9   : > { %1811 = vmatprep.subr.bf16.mxu0 %v2028_v1 }
 0x1fc   : > { %1812 = vmatpush3.bf16.msra.mxu0 %v1950_v11 }
 0x292   : > { %v715_v40 = vpop.f32.mrb[4].mxu0 }
 0x293   : > { %v1735_v41 = vpop.f32.mrb[5].mxu0 }
 0x294   : > { %v718_v42 = vpop.f32.mrb[6].mxu0  ;;  %v1954_v41 = vld [vmem:[%s2509_s4 + $0xa8] sm:$0xff]  }
 0x295   : > { %v1736_v43 = vpop.f32.mrb[7].mxu0 }
 0x296   : > { %v1955_v43 = vld [vmem:[%s2509_s4 + $0xb0] sm:$0xff]  }
 0x29a   : > { %v817_v44 = vpop.f32.mrb[4].mxu1 }
 0x29b   : > { %v818_v45 = vadd.f32 %v817_v44, %v715_v40  ;;  %v1755_v46 = vpop.f32.mrb[5].mxu1  ;;  %v1953_v40 = vld [vmem:[%s2509_s4 + $0xa0] sm:$0xff]  }
 0x29c   : > { %v820_v47 = vpop.f32.mrb[6].mxu1 }
 0x29d   : > { %v1756_v48 = vpop.f32.mrb[7].mxu1 }
 0x2b2   : > { %v937_v50 = vpop.f32.mrb[8].mxu0 }
 0x2b3   : > { %v943_v51 = vadd.f32 %v937_v50, %v818_v45  ;;  %v1775_v52 = vpop.f32.mrb[9].mxu0  ;;  %v1956_v45 = vld [vmem:[%s2509_s4 + $0xb8] sm:$0xff]  }
 0x2b4   : > { %v940_v53 = vpop.f32.mrb[10].mxu0 }
 0x2b5   : > { %v2334_v54 = vadd.f32 %v1537_v49, %v943_v51  ;;  %v1776_v55 = vpop.f32.mrb[11].mxu0 }
 0x2b7   : > { %949 = vadd.xlane.f32.xlu1 %v2334_v54  ;;  %v951_v56 = vmul.f32 %v2334_v54, %v2334_v54 }
 0x2bb   : > { %952 = vadd.xlane.f32.xlu1 %v951_v56 }
 0x344   : > { %v950_v12 = vpop.xlane.xlu1 %949 }
 0x345   : > { %v954_v13 = vmul.f32 0.125, %v950_v12  ;;  %v1601_v12 = vld [vmem:[%s2510_s5 + $0x7] ss:$0 sm:$0xff] }
 0x347   : > { %v956_v15 = vmul.f32 %v954_v13, %v954_v13  ;;  %v959_v20 = vsub.f32 %v2334_v54, %v954_v13 }
 0x348   : > { %v953_v14 = vpop.xlane.xlu1 %952 }
 0x349   : > { %v955_v16 = vmul.f32 0.125, %v953_v14  ;;  %v1602_v14 = vld [vmem:[%s2510_s5 + $0x8] ss:$0 sm:$0xff] }
 0x34b   : > { %v957_v17 = vsub.f32 %v955_v16, %v956_v15 }
 0x34d   : > { %v958_v18 = vmax.f32 %v957_v17, 0.0 }
 0x34f   : > { %v960_v19 = vadd.f32 1e-05, %v958_v18 }
 0x351   : > { %1960 = vrsqrt.f32 %v960_v19 }
 0x35b   : > { %v1961_v21 = vpop.eup %1960 }
 0x35c   : > { %v962_v23 = vmul.f32 %v1961_v21, %v959_v20 }
 0x35e   : > { %v967_v25 = vmul.f32 %v1538_v22, %v962_v23 }
 0x360   : > { %v2411_v26 = vadd.f32 %v1539_v24, %v967_v25 }
 0x362   : > { %v1610_v27 = vpack.c.bf16 %v2411_v26, %v2411_v26 }
 0x364   : > { %983 = vst [vmem:[#allocation3 + $0x8] sm:$0xf] %v1610_v27 }
 0x36b   : > { %v991_v30 = vld [vmem:[#allocation3 + $0x8] sm:$0xf] }
 0x36c   : > { %1794 = vmatmul.mubr.bf16.vlgmr.msra.gmra.mrb[8].mxu1 %v991_v30  ;;  %v1566_v31 = vcombine.low %v990_v28, %v991_v30  ;;  %v1957_v42 = vld [vmem:[#allocation3 + $0x8] sm:$0x1f]  }
 0x36d   : > { %1818 = vmatpush3.bf16.msra.mxu1 %v1947_v29  ;;  %1833 = vmatprep.mubr.msk.bf16.mxu1 %vm2029_vm0, %v2028_v1  ;;  %v1242_v44 = vshll.u32 %v1957_v42, 16  ;;  %v1240_v47 = vshrl.u32 %v1957_v42, 16 }
 0x36e   : > { %v1119_v33 = vshrl.u32 %v1566_v31, 16  ;;  %v1122_v34 = vshll.u32 %v1566_v31, 16  ;;  %1819 = vmatprep.subr.bf16.mxu1 %v2028_v1 }
 0x36f   : > { %v1244_v46 = vrot.slane %v1242_v44, 1 }
 0x370   : > { %v1121_v35 = vrot.slane %v1119_v33, 3  ;;  %v1124_v36 = vrot.slane %v1122_v34, 4 }
 0x371   : > { %1820 = vmatpush3.bf16.msra.mxu1 %v1949_v32  ;;  %v1245_v48 = vor.u32 %v1244_v46, %v1240_v47 }
 0x372   : > { %1821 = vmatprep.subr.bf16.mxu1 %v2028_v1  ;;  %v1125_v38 = vor.u32 %v1124_v36, %v1121_v35 }
 0x374   : > { %1814 = vmatmul.mubr.bf16.vlgmr.msra.gmra.mrb[12].mxu0 %v1125_v38 }
 0x375   : > { %1822 = vmatpush3.bf16.msra.mxu1 %v1951_v37 }
 0x376   : > { %1823 = vmatprep.subr.bf16.mxu1 %v2028_v1 }
 0x379   : > { %1824 = vmatpush3.bf16.msra.mxu1 %v1952_v39 }
 0x37a   : > { %1825 = vmatprep.subr.bf16.mxu1 %v2028_v1 }
 0x37d   : > { %1826 = vmatpush3.bf16.msra.mxu1 %v1953_v40 }
 0x37e   : > { %1827 = vmatprep.subr.bf16.mxu1 %v2028_v1 }
 0x381   : > { %1828 = vmatpush3.bf16.msra.mxu1 %v1954_v41 }
 0x382   : > { %1829 = vmatprep.subr.bf16.mxu1 %v2028_v1 }
 0x385   : > { %1830 = vmatpush3.bf16.msra.mxu1 %v1955_v43 }
 0x386   : > { %1831 = vmatprep.subr.bf16.mxu1 %v2028_v1 }
 0x389   : > { %1832 = vmatpush3.bf16.msra.mxu1 %v1956_v45 }
 0x38c   : > { %1834 = vmatmul.mubr.bf16.vlgmr.msra.gmra.mrb[12].mxu1 %v1245_v48 }
 0x43f   : > { %v1107_v49 = vpop.f32.mrb[8].mxu1 }
 0x440   : > { %v1795_v50 = vpop.f32.mrb[9].mxu1 }
 0x441   : > { %v1110_v51 = vpop.f32.mrb[10].mxu1 }
 0x442   : > { %v1796_v52 = vpop.f32.mrb[11].mxu1 }
 0x447   : > { %v1209_v53 = vpop.f32.mrb[12].mxu0 }
 0x448   : > { %v1210_v54 = vadd.f32 %v1209_v53, %v1107_v49  ;;  %v1815_v55 = vpop.f32.mrb[13].mxu0 }
 0x449   : > { %v1212_v56 = vpop.f32.mrb[14].mxu0 }
 0x44a   : > { %v1816_v57 = vpop.f32.mrb[15].mxu0 }
 0x45f   : > { %v1329_v60 = vpop.f32.mrb[12].mxu1 }
 0x460   : > { %v1335_v1 = vadd.f32 %v1329_v60, %v1210_v54  ;;  %v1835_v61 = vpop.f32.mrb[13].mxu1 }
 0x461   : > { %v1332_v62 = vpop.f32.mrb[14].mxu1 }
 0x462   : > { %v1340_v63 = vadd.f32 %v1600_v59, %v1335_v1  ;;  %v1836_v0 = vpop.f32.mrb[15].mxu1 }
 0x464   : > { %1341 = vadd.xlane.f32.xlu0 %v1340_v63  ;;  %v1343_v2 = vmul.f32 %v1340_v63, %v1340_v63 }
 0x466   : > { %1344 = vadd.xlane.f32.xlu1 %v1343_v2 }
 0x4f1   : > { %v1342_v3 = vpop.xlane.xlu0 %1341 }
 0x4f2   : > { %v1346_v4 = vmul.f32 0.125, %v1342_v3 }
 0x4f3   : > { %v1345_v5 = vpop.xlane.xlu1 %1344 }
 0x4f4   : > { %v1348_v6 = vmul.f32 %v1346_v4, %v1346_v4  ;;  %v1347_v7 = vmul.f32 0.125, %v1345_v5  ;;  %v1351_v58 = vsub.f32 %v1340_v63, %v1346_v4 }
 0x4f6   : > { %v1349_v8 = vsub.f32 %v1347_v7, %v1348_v6 }
 0x4f8   : > { %v1350_v9 = vmax.f32 %v1349_v8, 0.0 }
 0x4fa   : > { %v1352_v10 = vadd.f32 1e-05, %v1350_v9 }
 0x4fc   : > { %1962 = vrsqrt.f32 %v1352_v10 }
 0x506   : > { %v1963_v11 = vpop.eup %1962 }
 0x507   : > { %v1354_v13 = vmul.f32 %v1963_v11, %v1351_v58 }
 0x509   : > { %v1359_v15 = vmul.f32 %v1601_v12, %v1354_v13 }
 0x50b   : > { %v1364_v16 = vadd.f32 %v1602_v14, %v1359_v15 }
 0x50d   : > { %v1365_v17 = vadd.f32 %v1364_v16, %v2411_v26 }
 0x50f   : > { %1366 = vst [vmem:[%s244_s14] sm:$0xff] %v1365_v17 }
 0x510   : > { %1977 = shalt.err (!%p1974_p3)
}
 0x511   : > { %s1978_s29 = scalar_lea.hbm %s2463_s18, 128  ;;  %s1982_s11 = scalar_lea.hbm %s2511_s6, 256 }
 0x512   : > { %p1979_p4 = scmp.ne.s32.totalorder %s2463_s18, %s1978_s29  ;;  %p1983_p9 = scmp.lt.u32.totalorder %s2463_s18, %s2511_s6 }
 0x513   : > { %p1984_p10 = scmp.lt.u32.totalorder %s1982_s11, %s1978_s29  ;;  %p1986_p12 = scmp.lt.u32.totalorder %s1978_s29, %s2463_s18 }
 0x514   : > { %p1980_p7 = pnand %p1979_p4, %p2105_p5 }
 0x515   : > { %p1985_p11 = por %p1984_p10, %p1983_p9 }
 0x516   : > { %p1981_p8 = pneg %p1980_p7 }
 0x517   : > { %p1987_p13 = por %p1986_p12, %p1985_p11 }
 0x519   : > { %p1988_p0 = pnand %p1987_p13, %p1981_p8 }
 0x51b   : > { %1991 = shalt.err (!%p1988_p0)
}
 0x51c   : > { %1837 = dma.vmem_to_hbm [thread:$0]  (%p2105_p5), %s2465_s15, 128, %s2463_s18, %s1368_s19  }
 0x51d PF: > { %p1843_p1 = scmp.ge.s32.totalorder %s2026_s24, 2  ;;  %s1393_s14 = sand.u32 1, %s2014_s21  }
 0x51e   : > { %s1394_s17 = scalar_lea.sflag [#allocation5], %s1393_s14 }
 0x51f   : > { %p1840_p2 = pnand %p1843_p1, %p2109_p6 }
 0x521   : > { %2009 = dma.done.wait (!%p1840_p2), %s1394_s17, 128  }
 0x522   : > { %2011 = vsyncadd (!%p1840_p2), %s1394_s17, 4294967168  ;;  %p16_p3 = scmp.ge.s32.totalorder %s2092_s27, 4   ;;  %s2516_s21 = smov %s2018_s22 }
 0x523   : > { %s2517_s22 = smov %s2022_s23  ;;  %s2518_s23 = smov %s2103_s30 }
 0x524   : > { %s2519_s24 = smov %s2092_s27  ;;  %18 = sbr.rel (!%p16_p3) target bundleno = 3 (0x3), region = 83 }
 0x52b   :  { %1399 = vsyncpa [#allocation5], 1 }
 0x52c   :  { %1401 = vsyncpa [#allocation5 + $0x1], 1 }

</bundles_post_ra>
